<compile_context>
chip_gen: v7x
topology: tpu7x:2x2x1
jax: 0.10.0
libtpu: 0.0.40
codegen_flags: <defaults>
</compile_context>

<pallas_src>
import functools

import jax
import jax.numpy as jnp
from jax.experimental import pallas as pl
from jax.experimental.pallas import tpu as pltpu


def _round_up(x, m):
    return ((x + m - 1) // m) * m


def _vmem_limit_bytes():
    """Generation-aware scoped-VMEM limit.

    v5e/v6e have 128 MiB physical VMEM -> allow 80 MiB scoped (review: 64-96).
    v7x has 64 MiB per TC -> cap at 48 MiB.  If detection fails, fall back to
    the previously-validated 32 MiB.
    """
    try:
        cap = int(getattr(pltpu.get_tpu_info(), "vmem_capacity_bytes", 0))
    except Exception:
        cap = 0
    if cap >= 100 * 1024 * 1024:
        return 80 * 1024 * 1024
    if cap >= 60 * 1024 * 1024:
        return 48 * 1024 * 1024
    return 32 * 1024 * 1024


def _choose_tiles(M, K_pad, E_pad, in_bytes, out_bytes, vmem_limit):
    """Pick (tm, te): MXU-native row tile that fits the VMEM budget, plus an
    E-split for the single-row-tile (small M) megacore case."""
    budget = int(vmem_limit * 0.75)  # headroom for compiler-internal scratch

    def fits(tm, te):
        ws = (2 * tm * K_pad * in_bytes      # lhs rows, double-buffered
              + 2 * K_pad * te * in_bytes    # weight (counted 2x to be safe)
              + 2 * tm * te * out_bytes      # output tile, double-buffered
              + 2 * te * 4)                  # bias (f32)
        return ws <= budget

    m_ceiling = _round_up(M, 256)
    tm = None
    # Largest MXU-native tile that keeps >=2 grid steps (megacore) and fits VMEM.
    for cand in (2048, 1024, 512, 256):
        if cand <= m_ceiling and M >= 2 * cand and fits(cand, E_pad):
            tm = cand
            break
    if tm is None:
        # Small / medium M: smallest 256-multiple covering M (capped at 512).
        tm = min(512, m_ceiling)
        while tm > 256 and not fits(tm, E_pad):
            tm -= 256

    grid_m = _round_up(M, tm) // tm
    # Small-M megacore path (v7x): only one row tile -> split E over two steps
    # so both TensorCores get work (te stays a multiple of 128).
    if grid_m == 1 and E_pad >= 256 and E_pad % 256 == 0:
        te = E_pad // 2
    else:
        te = E_pad
    return tm, te


def _patch_embed_kernel(x_ref, w_ref, b_ref, o_ref):
    # x_ref: (tm, K_pad)   flattened patch rows (compute dtype, e.g. bf16)
    # w_ref: (K_pad, te)   projection weight slice (compute dtype)
    # b_ref: (1, te)       projection bias slice (float32)
    # o_ref: (tm, te)
    acc = jnp.dot(x_ref[...], w_ref[...], preferred_element_type=jnp.float32)
    o_ref[...] = (acc + b_ref[...]).astype(o_ref.dtype)


def patch_embed(x, weight, bias, patch_size, *, compute_dtype=jnp.bfloat16,
                out_dtype=None, single_buffer_weights=True):
    """x: (B, C, H, W) NCHW.  weight: (embed_dim, C, p, p) (PyTorch conv layout).
    bias: (embed_dim,).  Returns (B, num_patches, embed_dim)."""
    B, C, H, W = x.shape
    p = patch_size
    assert H % p == 0 and W % p == 0
    gh, gw = H // p, W // p
    num_patches = gh * gw
    embed_dim = weight.shape[0]
    K = C * p * p
    # Default keeps the module's output dtype; pass bfloat16 on v6e/v7x to cut
    # the (M, E) write traffic if downstream tolerates it.
    out_dtype = x.dtype if out_dtype is None else out_dtype

    # --- patch extraction glue (wrapper-side) --------------------------------
    # Cast sits inside the transpose expression so XLA fuses convert+transpose
    # into a single copy pass (K order (c, ph, pw) matches weight.reshape(E, K)).
    patches = (
        x.astype(compute_dtype)
        .reshape(B, C, gh, p, gw, p)
        .transpose(0, 2, 4, 1, 3, 5)
        .reshape(B * num_patches, K)
    )

    M = B * num_patches
    in_bytes = jnp.dtype(compute_dtype).itemsize
    out_bytes = jnp.dtype(out_dtype).itemsize

    # Lane-dense padding: K and E padded to multiples of 128 (zero padding is
    # numerically exact for the dot; sliced off below).
    K_pad = _round_up(K, 128)
    E_pad = _round_up(embed_dim, 128)

    w_mat = weight.reshape(embed_dim, K).T.astype(compute_dtype)   # (K, E)
    b_mat = bias.reshape(1, embed_dim).astype(jnp.float32)
    if K_pad != K:
        patches = jnp.pad(patches, ((0, 0), (0, K_pad - K)))
        w_mat = jnp.pad(w_mat, ((0, K_pad - K), (0, 0)))
    if E_pad != embed_dim:
        w_mat = jnp.pad(w_mat, ((0, 0), (0, E_pad - embed_dim)))
        b_mat = jnp.pad(b_mat, ((0, 0), (0, E_pad - embed_dim)))

    vmem_limit = _vmem_limit_bytes()
    tm, te = _choose_tiles(M, K_pad, E_pad, in_bytes, out_bytes, vmem_limit)
    M_pad = _round_up(M, tm)
    if M_pad != M:
        patches = jnp.pad(patches, ((0, M_pad - M), (0, 0)))

    grid_m = M_pad // tm
    grid_e = E_pad // te

    # Weight/bias block indices are constant along the row axis: single-buffer
    # them to free K_pad*te*in_bytes of VMEM (matters most under v7x's 64 MiB).
    if single_buffer_weights:
        w_spec = pl.BlockSpec((K_pad, te), lambda i, j: (0, j),
                              pipeline_mode=pl.Buffered(1))
        b_spec = pl.BlockSpec((1, te), lambda i, j: (0, j),
                              pipeline_mode=pl.Buffered(1))
    else:
        w_spec = pl.BlockSpec((K_pad, te), lambda i, j: (0, j))
        b_spec = pl.BlockSpec((1, te), lambda i, j: (0, j))

    cost = pl.CostEstimate(
        flops=2 * M_pad * K_pad * E_pad,
        transcendentals=0,
        bytes_accessed=(M_pad * K_pad * in_bytes
                        + K_pad * E_pad * in_bytes
                        + M_pad * E_pad * out_bytes),
    )

    out = pl.pallas_call(
        _patch_embed_kernel,
        out_shape=jax.ShapeDtypeStruct((M_pad, E_pad), out_dtype),
        grid_spec=pltpu.PrefetchScalarGridSpec(
            num_scalar_prefetch=0,
            grid=(grid_m, grid_e),
            in_specs=[
                pl.BlockSpec((tm, K_pad), lambda i, j: (i, 0)),  # patch rows
                w_spec,                                          # weight slice
                b_spec,                                          # bias slice
            ],
            out_specs=pl.BlockSpec((tm, te), lambda i, j: (i, j)),
        ),
        compiler_params=pltpu.CompilerParams(
            dimension_semantics=("parallel", "parallel"),
            vmem_limit_bytes=vmem_limit,
        ),
        cost_estimate=cost,
    )(patches, w_mat, b_mat)

    # (M_pad, E_pad) -> (B, num_patches, E)  == conv.flatten(2).transpose(1, 2)
    return out[:M, :embed_dim].reshape(B, num_patches, embed_dim)


def reference_patch_embed(x, weight, bias, patch_size):
    # Pure-JAX f32 reference using conv_general_dilated (NCHW, OIHW), stride = kernel.
    y = jax.lax.conv_general_dilated(
        x, weight,
        window_strides=(patch_size, patch_size),
        padding="VALID",
        dimension_numbers=("NCHW", "OIHW", "NCHW"),
    )
    y = y + bias.reshape(1, -1, 1, 1)
    B, E, gh, gw = y.shape
    return jnp.transpose(y.reshape(B, E, gh * gw), (0, 2, 1))


if __name__ == "__main__":
    # Small shapes consistent with the module: B=2, in_c=4, img 16x16, patch 8, embed 32
    B, C, H, W = 2, 4, 16, 16
    patch = 8
    embed_dim = 32

    key = jax.random.PRNGKey(0)
    kx, kw, kb = jax.random.split(key, 3)
    x = jax.random.normal(kx, (B, C, H, W), dtype=jnp.float32)
    weight = jax.random.normal(kw, (embed_dim, C, patch, patch), dtype=jnp.float32) * 0.02
    bias = jax.random.normal(kb, (embed_dim,), dtype=jnp.float32) * 0.02

    try:
        fn = jax.jit(functools.partial(patch_embed, patch_size=patch))
        out = jax.block_until_ready(fn(x, weight, bias))
    except Exception:
        # Fall back to the previously-validated double-buffered weight/bias specs
        # in case this Pallas/Mosaic version rejects pipeline_mode=Buffered(1).
        fn = jax.jit(functools.partial(patch_embed, patch_size=patch,
                                       single_buffer_weights=False))
        out = jax.block_until_ready(fn(x, weight, bias))

    ref = reference_patch_embed(x, weight, bias, patch)
    assert out.shape == (B, (H // patch) * (W // patch), embed_dim), out.shape
    # bf16 inputs with f32 accumulation -> loosened tolerance vs the f32 reference.
    max_err = float(jnp.max(jnp.abs(out - ref)))
    assert jnp.allclose(out, ref, atol=2e-2, rtol=2e-2), max_err

    print("KERNEL_OK")
</pallas_src>

<mosaic_0001>
module attributes {stable_mosaic.version = 11 : i64} {
  func.func @_patch_embed_kernel(%arg0: i32, %arg1: i32, %arg2: memref<256x256xbf16, #tpu.memory_space<vmem>>, %arg3: memref<256x128xbf16, #tpu.memory_space<vmem>>, %arg4: memref<1x128xf32, #tpu.memory_space<vmem>>, %arg5: memref<256x128xf32, #tpu.memory_space<vmem>>) attributes {dimension_semantics = [#tpu.dimension_semantics<parallel>, #tpu.dimension_semantics<parallel>], iteration_bounds = array<i64: 1, 1>, scalar_prefetch = 0 : i64, scratch_operands = 0 : i64, tpu.core_type = #tpu.core_type<tc>, window_params = [{transform_indices = @transform_0, window_bounds = array<i64: 256, 256>}, {pipeline_mode = #tpu.pipeline_mode<synchronous>, transform_indices = @transform_1, window_bounds = array<i64: 256, 128>}, {pipeline_mode = #tpu.pipeline_mode<synchronous>, transform_indices = @transform_2, window_bounds = array<i64: 1, 128>}, {transform_indices = @transform_3, window_bounds = array<i64: 256, 128>}]} {
    %c0 = arith.constant 0 : index
    %c0_0 = arith.constant 0 : index
    %0 = vector.load %arg2[%c0, %c0_0] : memref<256x256xbf16, #tpu.memory_space<vmem>>, vector<256x256xbf16>
    %c0_1 = arith.constant 0 : index
    %c0_2 = arith.constant 0 : index
    %1 = vector.load %arg3[%c0_1, %c0_2] : memref<256x128xbf16, #tpu.memory_space<vmem>>, vector<256x128xbf16>
    %cst = arith.constant dense<0.000000e+00> : vector<256x128xf32>
    %2 = tpu.matmul %0, %1, %cst {dimension_numbers = #tpu.dot_dimension_numbers<[1], [0], [0], [1], [0, 0, 1, 1], [], []>} : vector<256x256xbf16>, vector<256x128xbf16>, vector<256x128xf32> -> vector<256x128xf32>
    %c0_3 = arith.constant 0 : index
    %c0_4 = arith.constant 0 : index
    %3 = vector.load %arg4[%c0_3, %c0_4] : memref<1x128xf32, #tpu.memory_space<vmem>>, vector<1x128xf32>
    %4 = vector.broadcast %3 : vector<1x128xf32> to vector<256x128xf32>
    %5 = arith.addf %2, %4 : vector<256x128xf32>
    %c0_5 = arith.constant 0 : index
    %c0_6 = arith.constant 0 : index
    %6 = vector.load %arg5[%c0_5, %c0_6] : memref<256x128xf32, #tpu.memory_space<vmem>>, vector<256x128xf32>
    tpu.vector_store %arg5[%c0_5, %c0_6], %5 {strides = array<i32>} : memref<256x128xf32, #tpu.memory_space<vmem>>, vector<256x128xf32>,
    return
  }
  func.func @transform_0(%arg0: i32, %arg1: i32) -> (i32, i32) {
    %c0_i32 = arith.constant 0 : i32
    %c0_i32_0 = arith.constant 0 : i32
    return %arg0, %c0_i32 : i32, i32
  }
  func.func @transform_1(%arg0: i32, %arg1: i32) -> (i32, i32) {
    %c0_i32 = arith.constant 0 : i32
    %c0_i32_0 = arith.constant 0 : i32
    return %c0_i32, %arg1 : i32, i32
  }
  func.func @transform_2(%arg0: i32, %arg1: i32) -> (i32, i32) {
    %c0_i32 = arith.constant 0 : i32
    %c0_i32_0 = arith.constant 0 : i32
    return %c0_i32, %arg1 : i32, i32
  }
  func.func @transform_3(%arg0: i32, %arg1: i32) -> (i32, i32) {
    %c0_i32 = arith.constant 0 : i32
    return %arg0, %arg1 : i32, i32
  }
}

module attributes {stable_mosaic.version = 11 : i64} {
  func.func @_patch_embed_kernel(%arg0: i32, %arg1: i32, %arg2: memref<256x256xbf16, #tpu.memory_space<vmem>>, %arg3: memref<256x128xbf16, #tpu.memory_space<vmem>>, %arg4: memref<1x128xf32, #tpu.memory_space<vmem>>, %arg5: memref<256x128xf32, #tpu.memory_space<vmem>>) attributes {dimension_semantics = [#tpu.dimension_semantics<parallel>, #tpu.dimension_semantics<parallel>], iteration_bounds = array<i64: 1, 1>, scalar_prefetch = 0 : i64, scratch_operands = 0 : i64, tpu.core_type = #tpu.core_type<tc>, window_params = [{transform_indices = @transform_0, window_bounds = array<i64: 256, 256>}, {transform_indices = @transform_1, window_bounds = array<i64: 256, 128>}, {transform_indices = @transform_2, window_bounds = array<i64: 1, 128>}, {transform_indices = @transform_3, window_bounds = array<i64: 256, 128>}]} {
    %c0 = arith.constant 0 : index
    %c0_0 = arith.constant 0 : index
    %0 = vector.load %arg2[%c0, %c0_0] : memref<256x256xbf16, #tpu.memory_space<vmem>>, vector<256x256xbf16>
    %c0_1 = arith.constant 0 : index
    %c0_2 = arith.constant 0 : index
    %1 = vector.load %arg3[%c0_1, %c0_2] : memref<256x128xbf16, #tpu.memory_space<vmem>>, vector<256x128xbf16>
    %cst = arith.constant dense<0.000000e+00> : vector<256x128xf32>
    %2 = tpu.matmul %0, %1, %cst {dimension_numbers = #tpu.dot_dimension_numbers<[1], [0], [0], [1], [0, 0, 1, 1], [], []>} : vector<256x256xbf16>, vector<256x128xbf16>, vector<256x128xf32> -> vector<256x128xf32>
    %c0_3 = arith.constant 0 : index
    %c0_4 = arith.constant 0 : index
    %3 = vector.load %arg4[%c0_3, %c0_4] : memref<1x128xf32, #tpu.memory_space<vmem>>, vector<1x128xf32>
    %4 = vector.broadcast %3 : vector<1x128xf32> to vector<256x128xf32>
    %5 = arith.addf %2, %4 : vector<256x128xf32>
    %c0_5 = arith.constant 0 : index
    %c0_6 = arith.constant 0 : index
    %6 = vector.load %arg5[%c0_5, %c0_6] : memref<256x128xf32, #tpu.memory_space<vmem>>, vector<256x128xf32>
    tpu.vector_store %arg5[%c0_5, %c0_6], %5 {strides = array<i32>} : memref<256x128xf32, #tpu.memory_space<vmem>>, vector<256x128xf32>,
    return
  }
  func.func @transform_0(%arg0: i32, %arg1: i32) -> (i32, i32) {
    %c0_i32 = arith.constant 0 : i32
    %c0_i32_0 = arith.constant 0 : i32
    return %arg0, %c0_i32 : i32, i32
  }
  func.func @transform_1(%arg0: i32, %arg1: i32) -> (i32, i32) {
    %c0_i32 = arith.constant 0 : i32
    %c0_i32_0 = arith.constant 0 : i32
    return %c0_i32, %arg1 : i32, i32
  }
  func.func @transform_2(%arg0: i32, %arg1: i32) -> (i32, i32) {
    %c0_i32 = arith.constant 0 : i32
    %c0_i32_0 = arith.constant 0 : i32
    return %c0_i32, %arg1 : i32, i32
  }
  func.func @transform_3(%arg0: i32, %arg1: i32) -> (i32, i32) {
    %c0_i32 = arith.constant 0 : i32
    return %arg0, %arg1 : i32, i32
  }
}

</mosaic_0001>

<bundles_post_ra>
// kernel: patch_embed.1
= control target key start
LH: loop header
LB: loop body
LE: loop exit
PB: predicated region body
PF: predicated region fallthrough
CT: control target
= control target key end

     0   :  { %s1077_s1 = inlined_call_operand.vmem [shape: bf16[256,128], index: 1, kind: input, shape index: {}]   ;;  %s1078_s0 = inlined_call_operand.vmem [shape: bf16[256,256], index: 0, kind: input, shape index: {}]   ;;  %s1079_s2 = inlined_call_operand.vmem [shape: f32[1,128], index: 2, kind: input, shape index: {}]   ;;  %s1080_s3 = inlined_call_operand.vmem [shape: f32[256,128], index: 3, kind: output, shape index: {}]  }
   0x1   :  { %v716_v0 = vld [vmem:[%s1077_s1 + $0x40] sm:$0xff]   ;;  %v718_v2 = vld [vmem:[%s1077_s1 + $0x48] sm:$0xff]   ;;  %v720_v4 = vld [vmem:[%s1077_s1 + $0x50] sm:$0xff]  }
   0x2   :  { %v717_v1 = vld [vmem:[%s1077_s1] sm:$0xff]   ;;  %588 = vmatprep.subr.bf16.mxu0 %v716_v0  ;;  %700 = vmatprep.subr.bf16.mxu1 %v716_v0  ;;  %v719_v3 = vld [vmem:[%s1077_s1 + $0x8] sm:$0xff]   ;;  %v721_v5 = vld [vmem:[%s1077_s1 + $0x10] sm:$0xff]  }
   0x3   :  { %589 = vmatpush3.bf16.msra.mxu0 %v717_v1  ;;  %708 = vmatpush3.bf16.msra.mxu1 %v717_v1  ;;  %v722_v6 = vld [vmem:[%s1077_s1 + $0x58] sm:$0xff]   ;;  %v724_v8 = vld [vmem:[%s1077_s1 + $0x60] sm:$0xff]   ;;  %v726_v10 = vld [vmem:[%s1077_s1 + $0x68] sm:$0xff]  }
   0x4   :  { %590 = vmatprep.subr.bf16.mxu0 %v718_v2  ;;  %701 = vmatprep.subr.bf16.mxu1 %v718_v2  ;;  %v723_v7 = vld [vmem:[%s1077_s1 + $0x18] sm:$0xff]   ;;  %v725_v9 = vld [vmem:[%s1077_s1 + $0x20] sm:$0xff]   ;;  %v727_v13 = vld [vmem:[%s1077_s1 + $0x28] sm:$0xff]  }
   0x5   :  { %v734_v11 = vld [vmem:[%s1078_s0 + $0x4] ss:$8 sps:$4 sm:$0xff]   ;;  %v728_v14 = vld [vmem:[%s1077_s1 + $0x70] sm:$0xff]   ;;  %v730_v16 = vld [vmem:[%s1077_s1 + $0x78] sm:$0xff]  }
   0x6   :  { %v737_v12 = vld [vmem:[%s1078_s0 + $0x84] ss:$8 sps:$4 sm:$0xff]   ;;  %374 = vmatprep.mubr.bf16.mxu0 %v734_v11  ;;  %v729_v15 = vld [vmem:[%s1077_s1 + $0x30] sm:$0xff]   ;;  %v731_v17 = vld [vmem:[%s1077_s1 + $0x38] sm:$0xff]  }
   0x7   :  { %591 = vmatpush3.bf16.msra.mxu0 %v719_v3  ;;  %709 = vmatpush3.bf16.msra.mxu1 %v719_v3  ;;  %v732_v18 = vld [vmem:[%s1078_s0] ss:$8 sps:$4 sm:$0xff]   ;;  %v738_v20 = vld [vmem:[%s1078_s0 + $0x14] ss:$8 sps:$4 sm:$0xff]   ;;  %v742_v22 = vld [vmem:[%s1078_s0 + $0x10] ss:$8 sps:$4 sm:$0xff]  }
   0x8   :  { %592 = vmatprep.subr.bf16.mxu0 %v720_v4  ;;  %702 = vmatprep.subr.bf16.mxu1 %v720_v4  ;;  %v735_v19 = vld [vmem:[%s1078_s0 + $0x80] ss:$8 sps:$4 sm:$0xff]   ;;  %v740_v21 = vld [vmem:[%s1078_s0 + $0x94] ss:$8 sps:$4 sm:$0xff]   ;;  %v743_v23 = vld [vmem:[%s1078_s0 + $0x90] ss:$8 sps:$4 sm:$0xff]  }
   0x9   :  { %438 = vmatprep.mubr.bf16.mxu1 %v737_v12  ;;  %v744_v24 = vld [vmem:[%s1078_s0 + $0x24] ss:$8 sps:$4 sm:$0xff]   ;;  %v748_v26 = vld [vmem:[%s1078_s0 + $0x20] ss:$8 sps:$4 sm:$0xff]   ;;  %v750_v28 = vld [vmem:[%s1078_s0 + $0x34] ss:$8 sps:$4 sm:$0xff]  }
   0xa   :  { %v746_v25 = vld [vmem:[%s1078_s0 + $0xa4] ss:$8 sps:$4 sm:$0xff]   ;;  %v749_v27 = vld [vmem:[%s1078_s0 + $0xa0] ss:$8 sps:$4 sm:$0xff]   ;;  %v752_v29 = vld [vmem:[%s1078_s0 + $0xb4] ss:$8 sps:$4 sm:$0xff]  }
   0xb   :  { %593 = vmatpush3.bf16.msra.mxu0 %v721_v5  ;;  %710 = vmatpush3.bf16.msra.mxu1 %v721_v5  ;;  %v754_v30 = vld [vmem:[%s1078_s0 + $0x30] ss:$8 sps:$4 sm:$0xff]   ;;  %v756_v32 = vld [vmem:[%s1078_s0 + $0x44] ss:$8 sps:$4 sm:$0xff]   ;;  %v760_v34 = vld [vmem:[%s1078_s0 + $0x40] ss:$8 sps:$4 sm:$0xff]  }
   0xc   :  { %594 = vmatprep.subr.bf16.mxu0 %v722_v6  ;;  %703 = vmatprep.subr.bf16.mxu1 %v722_v6  ;;  %v755_v31 = vld [vmem:[%s1078_s0 + $0xb0] ss:$8 sps:$4 sm:$0xff]   ;;  %v758_v33 = vld [vmem:[%s1078_s0 + $0xc4] ss:$8 sps:$4 sm:$0xff]   ;;  %v761_v35 = vld [vmem:[%s1078_s0 + $0xc0] ss:$8 sps:$4 sm:$0xff]  }
   0xd   :  { %v762_v36 = vld [vmem:[%s1078_s0 + $0x54] ss:$8 sps:$4 sm:$0xff]   ;;  %v766_v38 = vld [vmem:[%s1078_s0 + $0x50] ss:$8 sps:$4 sm:$0xff]   ;;  %v768_v40 = vld [vmem:[%s1078_s0 + $0x64] ss:$8 sps:$4 sm:$0xff]  }
   0xe   :  { %v764_v37 = vld [vmem:[%s1078_s0 + $0xd4] ss:$8 sps:$4 sm:$0xff]   ;;  %v767_v39 = vld [vmem:[%s1078_s0 + $0xd0] ss:$8 sps:$4 sm:$0xff]   ;;  %v770_v41 = vld [vmem:[%s1078_s0 + $0xe4] ss:$8 sps:$4 sm:$0xff]  }
   0xf   :  { %595 = vmatpush3.bf16.msra.mxu0 %v723_v7  ;;  %711 = vmatpush3.bf16.msra.mxu1 %v723_v7  ;;  %v772_v42 = vld [vmem:[%s1078_s0 + $0x60] ss:$8 sps:$4 sm:$0xff]   ;;  %v774_v44 = vld [vmem:[%s1078_s0 + $0x74] ss:$8 sps:$4 sm:$0xff]   ;;  %v778_v46 = vld [vmem:[%s1078_s0 + $0x70] ss:$8 sps:$4 sm:$0xff]  }
  0x10   :  { %596 = vmatprep.subr.bf16.mxu0 %v724_v8  ;;  %704 = vmatprep.subr.bf16.mxu1 %v724_v8  ;;  %v773_v43 = vld [vmem:[%s1078_s0 + $0xe0] ss:$8 sps:$4 sm:$0xff]   ;;  %v776_v45 = vld [vmem:[%s1078_s0 + $0xf4] ss:$8 sps:$4 sm:$0xff]   ;;  %v779_v47 = vld [vmem:[%s1078_s0 + $0xf0] ss:$8 sps:$4 sm:$0xff]  }
  0x11   :  { %v947_v50 = vld [vmem:[%s1079_s2] ss:$0 sm:$0xff] }
  0x13   :  { %597 = vmatpush3.bf16.msra.mxu0 %v725_v9  ;;  %712 = vmatpush3.bf16.msra.mxu1 %v725_v9 }
  0x14   :  { %598 = vmatprep.subr.bf16.mxu0 %v726_v10  ;;  %705 = vmatprep.subr.bf16.mxu1 %v726_v10 }
  0x17   :  { %599 = vmatpush3.bf16.msra.mxu0 %v727_v13  ;;  %713 = vmatpush3.bf16.msra.mxu1 %v727_v13 }
  0x18   :  { %600 = vmatprep.subr.bf16.mxu0 %v728_v14  ;;  %706 = vmatprep.subr.bf16.mxu1 %v728_v14 }
  0x1b   :  { %601 = vmatpush3.bf16.msra.mxu0 %v729_v15  ;;  %714 = vmatpush3.bf16.msra.mxu1 %v729_v15 }
  0x1c   :  { %602 = vmatprep.subr.bf16.mxu0 %v730_v16  ;;  %707 = vmatprep.subr.bf16.mxu1 %v730_v16 }
  0x1f   :  { %603 = vmatpush3.bf16.msra.mxu0 %v731_v17  ;;  %715 = vmatpush3.bf16.msra.mxu1 %v731_v17 }
  0x22   :  { %375 = vmatmul.mubr.bf16.vlgmr.msra.gmra.mrb[0].mxu0 %v732_v18  ;;  %439 = vmatmul.mubr.bf16.vlgmr.msra.gmra.mrb[0].mxu1 %v735_v19 }
  0x23   :  { %382 = vmatprep.mubr.bf16.mxu0 %v738_v20  ;;  %446 = vmatprep.mubr.bf16.mxu1 %v740_v21 }
  0x2a   :  { %383 = vmatmul.mubr.bf16.gmra.mrb[4].mxu0 %v742_v22  ;;  %447 = vmatmul.mubr.bf16.gmra.mrb[4].mxu1 %v743_v23 }
  0x2b   :  { %390 = vmatprep.mubr.bf16.mxu0 %v744_v24  ;;  %454 = vmatprep.mubr.bf16.mxu1 %v746_v25 }
  0x32   :  { %391 = vmatmul.mubr.bf16.gmra.mrb[8].mxu0 %v748_v26  ;;  %455 = vmatmul.mubr.bf16.gmra.mrb[8].mxu1 %v749_v27 }
  0x33   :  { %398 = vmatprep.mubr.bf16.mxu0 %v750_v28  ;;  %462 = vmatprep.mubr.bf16.mxu1 %v752_v29 }
  0x3a   :  { %399 = vmatmul.mubr.bf16.gmra.mrb[12].mxu0 %v754_v30  ;;  %463 = vmatmul.mubr.bf16.gmra.mrb[12].mxu1 %v755_v31 }
  0x3b   :  { %406 = vmatprep.mubr.bf16.mxu0 %v756_v32  ;;  %470 = vmatprep.mubr.bf16.mxu1 %v758_v33 }
  0x42   :  { %407 = vmatmul.mubr.bf16.gmra.mrb[16].mxu0 %v760_v34  ;;  %471 = vmatmul.mubr.bf16.gmra.mrb[16].mxu1 %v761_v35 }
  0x43   :  { %414 = vmatprep.mubr.bf16.mxu0 %v762_v36  ;;  %478 = vmatprep.mubr.bf16.mxu1 %v764_v37 }
  0x4a   :  { %415 = vmatmul.mubr.bf16.gmra.mrb[20].mxu0 %v766_v38  ;;  %479 = vmatmul.mubr.bf16.gmra.mrb[20].mxu1 %v767_v39 }
  0x4b   :  { %422 = vmatprep.mubr.bf16.mxu0 %v768_v40  ;;  %486 = vmatprep.mubr.bf16.mxu1 %v770_v41 }
  0x52   :  { %423 = vmatmul.mubr.bf16.gmra.mrb[24].mxu0 %v772_v42  ;;  %487 = vmatmul.mubr.bf16.gmra.mrb[24].mxu1 %v773_v43 }
  0x53   :  { %430 = vmatprep.mubr.bf16.mxu0 %v774_v44  ;;  %494 = vmatprep.mubr.bf16.mxu1 %v776_v45 }
  0x5a   :  { %431 = vmatmul.mubr.bf16.gmra.mrb[28].mxu0 %v778_v46  ;;  %495 = vmatmul.mubr.bf16.gmra.mrb[28].mxu1 %v779_v47 }
  0xf5   :  { %v604_v48 = vpop.f32.mrb[0].mxu0  ;;  %v652_v49 = vpop.f32.mrb[0].mxu1 }
  0xf6   :  { %v605_v51 = vpop.f32.mrb[1].mxu0  ;;  %v653_v52 = vpop.f32.mrb[1].mxu1 }
  0xf7   :  { %v606_v53 = vadd.f32 %v605_v51, %v604_v48  ;;  %v654_v54 = vadd.f32 %v653_v52, %v652_v49  ;;  %v607_v55 = vpop.f32.mrb[2].mxu0  ;;  %v655_v56 = vpop.f32.mrb[2].mxu1 }
  0xf8   :  { %v608_v57 = vpop.f32.mrb[3].mxu0  ;;  %v656_v58 = vpop.f32.mrb[3].mxu1 }
  0xf9   :  { %v377_v59 = vadd.f32 %v606_v53, %v947_v50  ;;  %v441_v60 = vadd.f32 %v654_v54, %v947_v50  ;;  %v609_v61 = vadd.f32 %v608_v57, %v607_v55  ;;  %v657_v62 = vadd.f32 %v656_v58, %v655_v56 }
  0xfb   :  { %503 = vst [vmem:[%s1080_s3] sm:$0xff] %v377_v59  ;;  %519 = vst [vmem:[%s1080_s3 + $0x80] sm:$0xff] %v441_v60  ;;  %v380_v63 = vadd.f32 %v609_v61, %v947_v50  ;;  %v444_v0 = vadd.f32 %v657_v62, %v947_v50 }
  0xfd   :  { %504 = vst [vmem:[%s1080_s3 + $0x8] sm:$0xff] %v380_v63  ;;  %520 = vst [vmem:[%s1080_s3 + $0x88] sm:$0xff] %v444_v0  ;;  %v610_v1 = vpop.f32.mrb[4].mxu0  ;;  %v658_v2 = vpop.f32.mrb[4].mxu1 }
  0xfe   :  { %v611_v3 = vpop.f32.mrb[5].mxu0  ;;  %v659_v4 = vpop.f32.mrb[5].mxu1 }
  0xff   :  { %v612_v5 = vadd.f32 %v611_v3, %v610_v1  ;;  %v660_v6 = vadd.f32 %v659_v4, %v658_v2  ;;  %v613_v7 = vpop.f32.mrb[6].mxu0  ;;  %v661_v8 = vpop.f32.mrb[6].mxu1 }
 0x100   :  { %v614_v9 = vpop.f32.mrb[7].mxu0  ;;  %v662_v10 = vpop.f32.mrb[7].mxu1 }
 0x101   :  { %v385_v11 = vadd.f32 %v612_v5, %v947_v50  ;;  %v449_v12 = vadd.f32 %v660_v6, %v947_v50  ;;  %v615_v13 = vadd.f32 %v614_v9, %v613_v7  ;;  %v663_v14 = vadd.f32 %v662_v10, %v661_v8 }
 0x103   :  { %505 = vst [vmem:[%s1080_s3 + $0x10] sm:$0xff] %v385_v11  ;;  %521 = vst [vmem:[%s1080_s3 + $0x90] sm:$0xff] %v449_v12  ;;  %v388_v15 = vadd.f32 %v615_v13, %v947_v50  ;;  %v452_v16 = vadd.f32 %v663_v14, %v947_v50 }
 0x105   :  { %506 = vst [vmem:[%s1080_s3 + $0x18] sm:$0xff] %v388_v15  ;;  %522 = vst [vmem:[%s1080_s3 + $0x98] sm:$0xff] %v452_v16  ;;  %v616_v17 = vpop.f32.mrb[8].mxu0  ;;  %v664_v18 = vpop.f32.mrb[8].mxu1 }
 0x106   :  { %v617_v19 = vpop.f32.mrb[9].mxu0  ;;  %v665_v20 = vpop.f32.mrb[9].mxu1 }
 0x107   :  { %v618_v21 = vadd.f32 %v617_v19, %v616_v17  ;;  %v666_v22 = vadd.f32 %v665_v20, %v664_v18  ;;  %v619_v23 = vpop.f32.mrb[10].mxu0  ;;  %v667_v24 = vpop.f32.mrb[10].mxu1 }
 0x108   :  { %v620_v25 = vpop.f32.mrb[11].mxu0  ;;  %v668_v26 = vpop.f32.mrb[11].mxu1 }
 0x109   :  { %v393_v27 = vadd.f32 %v618_v21, %v947_v50  ;;  %v457_v28 = vadd.f32 %v666_v22, %v947_v50  ;;  %v621_v29 = vadd.f32 %v620_v25, %v619_v23  ;;  %v669_v30 = vadd.f32 %v668_v26, %v667_v24 }
 0x10b   :  { %507 = vst [vmem:[%s1080_s3 + $0x20] sm:$0xff] %v393_v27  ;;  %523 = vst [vmem:[%s1080_s3 + $0xa0] sm:$0xff] %v457_v28  ;;  %v396_v31 = vadd.f32 %v621_v29, %v947_v50  ;;  %v460_v32 = vadd.f32 %v669_v30, %v947_v50 }
 0x10d   :  { %508 = vst [vmem:[%s1080_s3 + $0x28] sm:$0xff] %v396_v31  ;;  %524 = vst [vmem:[%s1080_s3 + $0xa8] sm:$0xff] %v460_v32  ;;  %v622_v33 = vpop.f32.mrb[12].mxu0  ;;  %v670_v34 = vpop.f32.mrb[12].mxu1 }
 0x10e   :  { %v623_v35 = vpop.f32.mrb[13].mxu0  ;;  %v671_v36 = vpop.f32.mrb[13].mxu1 }
 0x10f   :  { %v624_v37 = vadd.f32 %v623_v35, %v622_v33  ;;  %v672_v38 = vadd.f32 %v671_v36, %v670_v34  ;;  %v625_v39 = vpop.f32.mrb[14].mxu0  ;;  %v673_v40 = vpop.f32.mrb[14].mxu1 }
 0x110   :  { %v626_v41 = vpop.f32.mrb[15].mxu0  ;;  %v674_v42 = vpop.f32.mrb[15].mxu1 }
 0x111   :  { %v401_v43 = vadd.f32 %v624_v37, %v947_v50  ;;  %v465_v44 = vadd.f32 %v672_v38, %v947_v50  ;;  %v627_v45 = vadd.f32 %v626_v41, %v625_v39  ;;  %v675_v46 = vadd.f32 %v674_v42, %v673_v40 }
 0x113   :  { %509 = vst [vmem:[%s1080_s3 + $0x30] sm:$0xff] %v401_v43  ;;  %525 = vst [vmem:[%s1080_s3 + $0xb0] sm:$0xff] %v465_v44  ;;  %v404_v47 = vadd.f32 %v627_v45, %v947_v50  ;;  %v468_v48 = vadd.f32 %v675_v46, %v947_v50 }
 0x115   :  { %510 = vst [vmem:[%s1080_s3 + $0x38] sm:$0xff] %v404_v47  ;;  %526 = vst [vmem:[%s1080_s3 + $0xb8] sm:$0xff] %v468_v48  ;;  %v628_v49 = vpop.f32.mrb[16].mxu0  ;;  %v676_v51 = vpop.f32.mrb[16].mxu1 }
 0x116   :  { %v629_v52 = vpop.f32.mrb[17].mxu0  ;;  %v677_v53 = vpop.f32.mrb[17].mxu1 }
 0x117   :  { %v630_v54 = vadd.f32 %v629_v52, %v628_v49  ;;  %v678_v55 = vadd.f32 %v677_v53, %v676_v51  ;;  %v631_v56 = vpop.f32.mrb[18].mxu0  ;;  %v679_v57 = vpop.f32.mrb[18].mxu1 }
 0x118   :  { %v632_v58 = vpop.f32.mrb[19].mxu0  ;;  %v680_v59 = vpop.f32.mrb[19].mxu1 }
 0x119   :  { %v409_v60 = vadd.f32 %v630_v54, %v947_v50  ;;  %v473_v61 = vadd.f32 %v678_v55, %v947_v50  ;;  %v633_v62 = vadd.f32 %v632_v58, %v631_v56  ;;  %v681_v63 = vadd.f32 %v680_v59, %v679_v57 }
 0x11b   :  { %511 = vst [vmem:[%s1080_s3 + $0x40] sm:$0xff] %v409_v60  ;;  %527 = vst [vmem:[%s1080_s3 + $0xc0] sm:$0xff] %v473_v61  ;;  %v412_v0 = vadd.f32 %v633_v62, %v947_v50  ;;  %v476_v1 = vadd.f32 %v681_v63, %v947_v50 }
 0x11d   :  { %512 = vst [vmem:[%s1080_s3 + $0x48] sm:$0xff] %v412_v0  ;;  %528 = vst [vmem:[%s1080_s3 + $0xc8] sm:$0xff] %v476_v1  ;;  %v634_v2 = vpop.f32.mrb[20].mxu0  ;;  %v682_v3 = vpop.f32.mrb[20].mxu1 }
 0x11e   :  { %v635_v4 = vpop.f32.mrb[21].mxu0  ;;  %v683_v5 = vpop.f32.mrb[21].mxu1 }
 0x11f   :  { %v636_v6 = vadd.f32 %v635_v4, %v634_v2  ;;  %v684_v7 = vadd.f32 %v683_v5, %v682_v3  ;;  %v637_v8 = vpop.f32.mrb[22].mxu0  ;;  %v685_v9 = vpop.f32.mrb[22].mxu1 }
 0x120   :  { %v638_v10 = vpop.f32.mrb[23].mxu0  ;;  %v686_v11 = vpop.f32.mrb[23].mxu1 }
 0x121   :  { %v417_v12 = vadd.f32 %v636_v6, %v947_v50  ;;  %v481_v13 = vadd.f32 %v684_v7, %v947_v50  ;;  %v639_v14 = vadd.f32 %v638_v10, %v637_v8  ;;  %v687_v15 = vadd.f32 %v686_v11, %v685_v9 }
 0x123   :  { %513 = vst [vmem:[%s1080_s3 + $0x50] sm:$0xff] %v417_v12  ;;  %529 = vst [vmem:[%s1080_s3 + $0xd0] sm:$0xff] %v481_v13  ;;  %v420_v16 = vadd.f32 %v639_v14, %v947_v50  ;;  %v484_v17 = vadd.f32 %v687_v15, %v947_v50 }
 0x125   :  { %514 = vst [vmem:[%s1080_s3 + $0x58] sm:$0xff] %v420_v16  ;;  %530 = vst [vmem:[%s1080_s3 + $0xd8] sm:$0xff] %v484_v17  ;;  %v640_v18 = vpop.f32.mrb[24].mxu0  ;;  %v688_v19 = vpop.f32.mrb[24].mxu1 }
 0x126   :  { %v641_v20 = vpop.f32.mrb[25].mxu0  ;;  %v689_v21 = vpop.f32.mrb[25].mxu1 }
 0x127   :  { %v642_v22 = vadd.f32 %v641_v20, %v640_v18  ;;  %v690_v23 = vadd.f32 %v689_v21, %v688_v19  ;;  %v643_v24 = vpop.f32.mrb[26].mxu0  ;;  %v691_v25 = vpop.f32.mrb[26].mxu1 }
 0x128   :  { %v644_v26 = vpop.f32.mrb[27].mxu0  ;;  %v692_v27 = vpop.f32.mrb[27].mxu1 }
 0x129   :  { %v425_v28 = vadd.f32 %v642_v22, %v947_v50  ;;  %v489_v29 = vadd.f32 %v690_v23, %v947_v50  ;;  %v645_v30 = vadd.f32 %v644_v26, %v643_v24  ;;  %v693_v31 = vadd.f32 %v692_v27, %v691_v25 }
 0x12b   :  { %515 = vst [vmem:[%s1080_s3 + $0x60] sm:$0xff] %v425_v28  ;;  %531 = vst [vmem:[%s1080_s3 + $0xe0] sm:$0xff] %v489_v29  ;;  %v428_v32 = vadd.f32 %v645_v30, %v947_v50  ;;  %v492_v33 = vadd.f32 %v693_v31, %v947_v50 }
 0x12d   :  { %516 = vst [vmem:[%s1080_s3 + $0x68] sm:$0xff] %v428_v32  ;;  %532 = vst [vmem:[%s1080_s3 + $0xe8] sm:$0xff] %v492_v33  ;;  %v646_v34 = vpop.f32.mrb[28].mxu0  ;;  %v694_v35 = vpop.f32.mrb[28].mxu1 }
 0x12e   :  { %v647_v36 = vpop.f32.mrb[29].mxu0  ;;  %v695_v37 = vpop.f32.mrb[29].mxu1 }
 0x12f   :  { %v648_v38 = vadd.f32 %v647_v36, %v646_v34  ;;  %v696_v39 = vadd.f32 %v695_v37, %v694_v35  ;;  %v649_v40 = vpop.f32.mrb[30].mxu0  ;;  %v697_v41 = vpop.f32.mrb[30].mxu1 }
 0x130   :  { %v650_v42 = vpop.f32.mrb[31].mxu0  ;;  %v698_v43 = vpop.f32.mrb[31].mxu1 }
 0x131   :  { %v433_v44 = vadd.f32 %v648_v38, %v947_v50  ;;  %v497_v45 = vadd.f32 %v696_v39, %v947_v50  ;;  %v651_v46 = vadd.f32 %v650_v42, %v649_v40  ;;  %v699_v47 = vadd.f32 %v698_v43, %v697_v41 }
 0x133   :  { %517 = vst [vmem:[%s1080_s3 + $0x70] sm:$0xff] %v433_v44  ;;  %533 = vst [vmem:[%s1080_s3 + $0xf0] sm:$0xff] %v497_v45  ;;  %v436_v48 = vadd.f32 %v651_v46, %v947_v50  ;;  %v500_v49 = vadd.f32 %v699_v47, %v947_v50 }
 0x135   :  { %518 = vst [vmem:[%s1080_s3 + $0x78] sm:$0xff] %v436_v48  ;;  %534 = vst [vmem:[%s1080_s3 + $0xf8] sm:$0xff] %v500_v49 }

// kernel: patch_embed.1
= control target key start
LH: loop header
LB: loop body
LE: loop exit
PB: predicated region body
PF: predicated region fallthrough
CT: control target
= control target key end

     0   :  { %s1077_s1 = inlined_call_operand.vmem [shape: bf16[256,128], index: 1, kind: input, shape index: {}]   ;;  %s1078_s0 = inlined_call_operand.vmem [shape: bf16[256,256], index: 0, kind: input, shape index: {}]   ;;  %s1079_s2 = inlined_call_operand.vmem [shape: f32[1,128], index: 2, kind: input, shape index: {}]   ;;  %s1080_s3 = inlined_call_operand.vmem [shape: f32[256,128], index: 3, kind: output, shape index: {}]  }
   0x1   :  { %v716_v0 = vld [vmem:[%s1077_s1 + $0x40] sm:$0xff]   ;;  %v718_v2 = vld [vmem:[%s1077_s1 + $0x48] sm:$0xff]   ;;  %v720_v4 = vld [vmem:[%s1077_s1 + $0x50] sm:$0xff]  }
   0x2   :  { %v717_v1 = vld [vmem:[%s1077_s1] sm:$0xff]   ;;  %588 = vmatprep.subr.bf16.mxu0 %v716_v0  ;;  %700 = vmatprep.subr.bf16.mxu1 %v716_v0  ;;  %v719_v3 = vld [vmem:[%s1077_s1 + $0x8] sm:$0xff]   ;;  %v721_v5 = vld [vmem:[%s1077_s1 + $0x10] sm:$0xff]  }
   0x3   :  { %589 = vmatpush3.bf16.msra.mxu0 %v717_v1  ;;  %708 = vmatpush3.bf16.msra.mxu1 %v717_v1  ;;  %v722_v6 = vld [vmem:[%s1077_s1 + $0x58] sm:$0xff]   ;;  %v724_v8 = vld [vmem:[%s1077_s1 + $0x60] sm:$0xff]   ;;  %v726_v10 = vld [vmem:[%s1077_s1 + $0x68] sm:$0xff]  }
   0x4   :  { %590 = vmatprep.subr.bf16.mxu0 %v718_v2  ;;  %701 = vmatprep.subr.bf16.mxu1 %v718_v2  ;;  %v723_v7 = vld [vmem:[%s1077_s1 + $0x18] sm:$0xff]   ;;  %v725_v9 = vld [vmem:[%s1077_s1 + $0x20] sm:$0xff]   ;;  %v727_v13 = vld [vmem:[%s1077_s1 + $0x28] sm:$0xff]  }
   0x5   :  { %v734_v11 = vld [vmem:[%s1078_s0 + $0x4] ss:$8 sps:$4 sm:$0xff]   ;;  %v728_v14 = vld [vmem:[%s1077_s1 + $0x70] sm:$0xff]   ;;  %v730_v16 = vld [vmem:[%s1077_s1 + $0x78] sm:$0xff]  }
   0x6   :  { %v737_v12 = vld [vmem:[%s1078_s0 + $0x84] ss:$8 sps:$4 sm:$0xff]   ;;  %374 = vmatprep.mubr.bf16.mxu0 %v734_v11  ;;  %v729_v15 = vld [vmem:[%s1077_s1 + $0x30] sm:$0xff]   ;;  %v731_v17 = vld [vmem:[%s1077_s1 + $0x38] sm:$0xff]  }
   0x7   :  { %591 = vmatpush3.bf16.msra.mxu0 %v719_v3  ;;  %709 = vmatpush3.bf16.msra.mxu1 %v719_v3  ;;  %v732_v18 = vld [vmem:[%s1078_s0] ss:$8 sps:$4 sm:$0xff]   ;;  %v738_v20 = vld [vmem:[%s1078_s0 + $0x14] ss:$8 sps:$4 sm:$0xff]   ;;  %v742_v22 = vld [vmem:[%s1078_s0 + $0x10] ss:$8 sps:$4 sm:$0xff]  }
   0x8   :  { %592 = vmatprep.subr.bf16.mxu0 %v720_v4  ;;  %702 = vmatprep.subr.bf16.mxu1 %v720_v4  ;;  %v735_v19 = vld [vmem:[%s1078_s0 + $0x80] ss:$8 sps:$4 sm:$0xff]   ;;  %v740_v21 = vld [vmem:[%s1078_s0 + $0x94] ss:$8 sps:$4 sm:$0xff]   ;;  %v743_v23 = vld [vmem:[%s1078_s0 + $0x90] ss:$8 sps:$4 sm:$0xff]  }
   0x9   :  { %438 = vmatprep.mubr.bf16.mxu1 %v737_v12  ;;  %v744_v24 = vld [vmem:[%s1078_s0 + $0x24] ss:$8 sps:$4 sm:$0xff]   ;;  %v748_v26 = vld [vmem:[%s1078_s0 + $0x20] ss:$8 sps:$4 sm:$0xff]   ;;  %v750_v28 = vld [vmem:[%s1078_s0 + $0x34] ss:$8 sps:$4 sm:$0xff]  }
   0xa   :  { %v746_v25 = vld [vmem:[%s1078_s0 + $0xa4] ss:$8 sps:$4 sm:$0xff]   ;;  %v749_v27 = vld [vmem:[%s1078_s0 + $0xa0] ss:$8 sps:$4 sm:$0xff]   ;;  %v752_v29 = vld [vmem:[%s1078_s0 + $0xb4] ss:$8 sps:$4 sm:$0xff]  }
   0xb   :  { %593 = vmatpush3.bf16.msra.mxu0 %v721_v5  ;;  %710 = vmatpush3.bf16.msra.mxu1 %v721_v5  ;;  %v754_v30 = vld [vmem:[%s1078_s0 + $0x30] ss:$8 sps:$4 sm:$0xff]   ;;  %v756_v32 = vld [vmem:[%s1078_s0 + $0x44] ss:$8 sps:$4 sm:$0xff]   ;;  %v760_v34 = vld [vmem:[%s1078_s0 + $0x40] ss:$8 sps:$4 sm:$0xff]  }
   0xc   :  { %594 = vmatprep.subr.bf16.mxu0 %v722_v6  ;;  %703 = vmatprep.subr.bf16.mxu1 %v722_v6  ;;  %v755_v31 = vld [vmem:[%s1078_s0 + $0xb0] ss:$8 sps:$4 sm:$0xff]   ;;  %v758_v33 = vld [vmem:[%s1078_s0 + $0xc4] ss:$8 sps:$4 sm:$0xff]   ;;  %v761_v35 = vld [vmem:[%s1078_s0 + $0xc0] ss:$8 sps:$4 sm:$0xff]  }
   0xd   :  { %v762_v36 = vld [vmem:[%s1078_s0 + $0x54] ss:$8 sps:$4 sm:$0xff]   ;;  %v766_v38 = vld [vmem:[%s1078_s0 + $0x50] ss:$8 sps:$4 sm:$0xff]   ;;  %v768_v40 = vld [vmem:[%s1078_s0 + $0x64] ss:$8 sps:$4 sm:$0xff]  }
   0xe   :  { %v764_v37 = vld [vmem:[%s1078_s0 + $0xd4] ss:$8 sps:$4 sm:$0xff]   ;;  %v767_v39 = vld [vmem:[%s1078_s0 + $0xd0] ss:$8 sps:$4 sm:$0xff]   ;;  %v770_v41 = vld [vmem:[%s1078_s0 + $0xe4] ss:$8 sps:$4 sm:$0xff]  }
   0xf   :  { %595 = vmatpush3.bf16.msra.mxu0 %v723_v7  ;;  %711 = vmatpush3.bf16.msra.mxu1 %v723_v7  ;;  %v772_v42 = vld [vmem:[%s1078_s0 + $0x60] ss:$8 sps:$4 sm:$0xff]   ;;  %v774_v44 = vld [vmem:[%s1078_s0 + $0x74] ss:$8 sps:$4 sm:$0xff]   ;;  %v778_v46 = vld [vmem:[%s1078_s0 + $0x70] ss:$8 sps:$4 sm:$0xff]  }
  0x10   :  { %596 = vmatprep.subr.bf16.mxu0 %v724_v8  ;;  %704 = vmatprep.subr.bf16.mxu1 %v724_v8  ;;  %v773_v43 = vld [vmem:[%s1078_s0 + $0xe0] ss:$8 sps:$4 sm:$0xff]   ;;  %v776_v45 = vld [vmem:[%s1078_s0 + $0xf4] ss:$8 sps:$4 sm:$0xff]   ;;  %v779_v47 = vld [vmem:[%s1078_s0 + $0xf0] ss:$8 sps:$4 sm:$0xff]  }
  0x11   :  { %v947_v50 = vld [vmem:[%s1079_s2] ss:$0 sm:$0xff] }
  0x13   :  { %597 = vmatpush3.bf16.msra.mxu0 %v725_v9  ;;  %712 = vmatpush3.bf16.msra.mxu1 %v725_v9 }
  0x14   :  { %598 = vmatprep.subr.bf16.mxu0 %v726_v10  ;;  %705 = vmatprep.subr.bf16.mxu1 %v726_v10 }
  0x17   :  { %599 = vmatpush3.bf16.msra.mxu0 %v727_v13  ;;  %713 = vmatpush3.bf16.msra.mxu1 %v727_v13 }
  0x18   :  { %600 = vmatprep.subr.bf16.mxu0 %v728_v14  ;;  %706 = vmatprep.subr.bf16.mxu1 %v728_v14 }
  0x1b   :  { %601 = vmatpush3.bf16.msra.mxu0 %v729_v15  ;;  %714 = vmatpush3.bf16.msra.mxu1 %v729_v15 }
  0x1c   :  { %602 = vmatprep.subr.bf16.mxu0 %v730_v16  ;;  %707 = vmatprep.subr.bf16.mxu1 %v730_v16 }
  0x1f   :  { %603 = vmatpush3.bf16.msra.mxu0 %v731_v17  ;;  %715 = vmatpush3.bf16.msra.mxu1 %v731_v17 }
  0x22   :  { %375 = vmatmul.mubr.bf16.vlgmr.msra.gmra.mrb[0].mxu0 %v732_v18  ;;  %439 = vmatmul.mubr.bf16.vlgmr.msra.gmra.mrb[0].mxu1 %v735_v19 }
  0x23   :  { %382 = vmatprep.mubr.bf16.mxu0 %v738_v20  ;;  %446 = vmatprep.mubr.bf16.mxu1 %v740_v21 }
  0x2a   :  { %383 = vmatmul.mubr.bf16.gmra.mrb[4].mxu0 %v742_v22  ;;  %447 = vmatmul.mubr.bf16.gmra.mrb[4].mxu1 %v743_v23 }
  0x2b   :  { %390 = vmatprep.mubr.bf16.mxu0 %v744_v24  ;;  %454 = vmatprep.mubr.bf16.mxu1 %v746_v25 }
  0x32   :  { %391 = vmatmul.mubr.bf16.gmra.mrb[8].mxu0 %v748_v26  ;;  %455 = vmatmul.mubr.bf16.gmra.mrb[8].mxu1 %v749_v27 }
  0x33   :  { %398 = vmatprep.mubr.bf16.mxu0 %v750_v28  ;;  %462 = vmatprep.mubr.bf16.mxu1 %v752_v29 }
  0x3a   :  { %399 = vmatmul.mubr.bf16.gmra.mrb[12].mxu0 %v754_v30  ;;  %463 = vmatmul.mubr.bf16.gmra.mrb[12].mxu1 %v755_v31 }
  0x3b   :  { %406 = vmatprep.mubr.bf16.mxu0 %v756_v32  ;;  %470 = vmatprep.mubr.bf16.mxu1 %v758_v33 }
  0x42   :  { %407 = vmatmul.mubr.bf16.gmra.mrb[16].mxu0 %v760_v34  ;;  %471 = vmatmul.mubr.bf16.gmra.mrb[16].mxu1 %v761_v35 }
  0x43   :  { %414 = vmatprep.mubr.bf16.mxu0 %v762_v36  ;;  %478 = vmatprep.mubr.bf16.mxu1 %v764_v37 }
  0x4a   :  { %415 = vmatmul.mubr.bf16.gmra.mrb[20].mxu0 %v766_v38  ;;  %479 = vmatmul.mubr.bf16.gmra.mrb[20].mxu1 %v767_v39 }
  0x4b   :  { %422 = vmatprep.mubr.bf16.mxu0 %v768_v40  ;;  %486 = vmatprep.mubr.bf16.mxu1 %v770_v41 }
  0x52   :  { %423 = vmatmul.mubr.bf16.gmra.mrb[24].mxu0 %v772_v42  ;;  %487 = vmatmul.mubr.bf16.gmra.mrb[24].mxu1 %v773_v43 }
  0x53   :  { %430 = vmatprep.mubr.bf16.mxu0 %v774_v44  ;;  %494 = vmatprep.mubr.bf16.mxu1 %v776_v45 }
  0x5a   :  { %431 = vmatmul.mubr.bf16.gmra.mrb[28].mxu0 %v778_v46  ;;  %495 = vmatmul.mubr.bf16.gmra.mrb[28].mxu1 %v779_v47 }
  0xf5   :  { %v604_v48 = vpop.f32.mrb[0].mxu0  ;;  %v652_v49 = vpop.f32.mrb[0].mxu1 }
  0xf6   :  { %v605_v51 = vpop.f32.mrb[1].mxu0  ;;  %v653_v52 = vpop.f32.mrb[1].mxu1 }
  0xf7   :  { %v606_v53 = vadd.f32 %v605_v51, %v604_v48  ;;  %v654_v54 = vadd.f32 %v653_v52, %v652_v49  ;;  %v607_v55 = vpop.f32.mrb[2].mxu0  ;;  %v655_v56 = vpop.f32.mrb[2].mxu1 }
  0xf8   :  { %v608_v57 = vpop.f32.mrb[3].mxu0  ;;  %v656_v58 = vpop.f32.mrb[3].mxu1 }
  0xf9   :  { %v377_v59 = vadd.f32 %v606_v53, %v947_v50  ;;  %v441_v60 = vadd.f32 %v654_v54, %v947_v50  ;;  %v609_v61 = vadd.f32 %v608_v57, %v607_v55  ;;  %v657_v62 = vadd.f32 %v656_v58, %v655_v56 }
  0xfb   :  { %503 = vst [vmem:[%s1080_s3] sm:$0xff] %v377_v59  ;;  %519 = vst [vmem:[%s1080_s3 + $0x80] sm:$0xff] %v441_v60  ;;  %v380_v63 = vadd.f32 %v609_v61, %v947_v50  ;;  %v444_v0 = vadd.f32 %v657_v62, %v947_v50 }
  0xfd   :  { %504 = vst [vmem:[%s1080_s3 + $0x8] sm:$0xff] %v380_v63  ;;  %520 = vst [vmem:[%s1080_s3 + $0x88] sm:$0xff] %v444_v0  ;;  %v610_v1 = vpop.f32.mrb[4].mxu0  ;;  %v658_v2 = vpop.f32.mrb[4].mxu1 }
  0xfe   :  { %v611_v3 = vpop.f32.mrb[5].mxu0  ;;  %v659_v4 = vpop.f32.mrb[5].mxu1 }
  0xff   :  { %v612_v5 = vadd.f32 %v611_v3, %v610_v1  ;;  %v660_v6 = vadd.f32 %v659_v4, %v658_v2  ;;  %v613_v7 = vpop.f32.mrb[6].mxu0  ;;  %v661_v8 = vpop.f32.mrb[6].mxu1 }
 0x100   :  { %v614_v9 = vpop.f32.mrb[7].mxu0  ;;  %v662_v10 = vpop.f32.mrb[7].mxu1 }
 0x101   :  { %v385_v11 = vadd.f32 %v612_v5, %v947_v50  ;;  %v449_v12 = vadd.f32 %v660_v6, %v947_v50  ;;  %v615_v13 = vadd.f32 %v614_v9, %v613_v7  ;;  %v663_v14 = vadd.f32 %v662_v10, %v661_v8 }
 0x103   :  { %505 = vst [vmem:[%s1080_s3 + $0x10] sm:$0xff] %v385_v11  ;;  %521 = vst [vmem:[%s1080_s3 + $0x90] sm:$0xff] %v449_v12  ;;  %v388_v15 = vadd.f32 %v615_v13, %v947_v50  ;;  %v452_v16 = vadd.f32 %v663_v14, %v947_v50 }
 0x105   :  { %506 = vst [vmem:[%s1080_s3 + $0x18] sm:$0xff] %v388_v15  ;;  %522 = vst [vmem:[%s1080_s3 + $0x98] sm:$0xff] %v452_v16  ;;  %v616_v17 = vpop.f32.mrb[8].mxu0  ;;  %v664_v18 = vpop.f32.mrb[8].mxu1 }
 0x106   :  { %v617_v19 = vpop.f32.mrb[9].mxu0  ;;  %v665_v20 = vpop.f32.mrb[9].mxu1 }
 0x107   :  { %v618_v21 = vadd.f32 %v617_v19, %v616_v17  ;;  %v666_v22 = vadd.f32 %v665_v20, %v664_v18  ;;  %v619_v23 = vpop.f32.mrb[10].mxu0  ;;  %v667_v24 = vpop.f32.mrb[10].mxu1 }
 0x108   :  { %v620_v25 = vpop.f32.mrb[11].mxu0  ;;  %v668_v26 = vpop.f32.mrb[11].mxu1 }
 0x109   :  { %v393_v27 = vadd.f32 %v618_v21, %v947_v50  ;;  %v457_v28 = vadd.f32 %v666_v22, %v947_v50  ;;  %v621_v29 = vadd.f32 %v620_v25, %v619_v23  ;;  %v669_v30 = vadd.f32 %v668_v26, %v667_v24 }
 0x10b   :  { %507 = vst [vmem:[%s1080_s3 + $0x20] sm:$0xff] %v393_v27  ;;  %523 = vst [vmem:[%s1080_s3 + $0xa0] sm:$0xff] %v457_v28  ;;  %v396_v31 = vadd.f32 %v621_v29, %v947_v50  ;;  %v460_v32 = vadd.f32 %v669_v30, %v947_v50 }
 0x10d   :  { %508 = vst [vmem:[%s1080_s3 + $0x28] sm:$0xff] %v396_v31  ;;  %524 = vst [vmem:[%s1080_s3 + $0xa8] sm:$0xff] %v460_v32  ;;  %v622_v33 = vpop.f32.mrb[12].mxu0  ;;  %v670_v34 = vpop.f32.mrb[12].mxu1 }
 0x10e   :  { %v623_v35 = vpop.f32.mrb[13].mxu0  ;;  %v671_v36 = vpop.f32.mrb[13].mxu1 }
 0x10f   :  { %v624_v37 = vadd.f32 %v623_v35, %v622_v33  ;;  %v672_v38 = vadd.f32 %v671_v36, %v670_v34  ;;  %v625_v39 = vpop.f32.mrb[14].mxu0  ;;  %v673_v40 = vpop.f32.mrb[14].mxu1 }
 0x110   :  { %v626_v41 = vpop.f32.mrb[15].mxu0  ;;  %v674_v42 = vpop.f32.mrb[15].mxu1 }
 0x111   :  { %v401_v43 = vadd.f32 %v624_v37, %v947_v50  ;;  %v465_v44 = vadd.f32 %v672_v38, %v947_v50  ;;  %v627_v45 = vadd.f32 %v626_v41, %v625_v39  ;;  %v675_v46 = vadd.f32 %v674_v42, %v673_v40 }
 0x113   :  { %509 = vst [vmem:[%s1080_s3 + $0x30] sm:$0xff] %v401_v43  ;;  %525 = vst [vmem:[%s1080_s3 + $0xb0] sm:$0xff] %v465_v44  ;;  %v404_v47 = vadd.f32 %v627_v45, %v947_v50  ;;  %v468_v48 = vadd.f32 %v675_v46, %v947_v50 }
 0x115   :  { %510 = vst [vmem:[%s1080_s3 + $0x38] sm:$0xff] %v404_v47  ;;  %526 = vst [vmem:[%s1080_s3 + $0xb8] sm:$0xff] %v468_v48  ;;  %v628_v49 = vpop.f32.mrb[16].mxu0  ;;  %v676_v51 = vpop.f32.mrb[16].mxu1 }
 0x116   :  { %v629_v52 = vpop.f32.mrb[17].mxu0  ;;  %v677_v53 = vpop.f32.mrb[17].mxu1 }
 0x117   :  { %v630_v54 = vadd.f32 %v629_v52, %v628_v49  ;;  %v678_v55 = vadd.f32 %v677_v53, %v676_v51  ;;  %v631_v56 = vpop.f32.mrb[18].mxu0  ;;  %v679_v57 = vpop.f32.mrb[18].mxu1 }
 0x118   :  { %v632_v58 = vpop.f32.mrb[19].mxu0  ;;  %v680_v59 = vpop.f32.mrb[19].mxu1 }
 0x119   :  { %v409_v60 = vadd.f32 %v630_v54, %v947_v50  ;;  %v473_v61 = vadd.f32 %v678_v55, %v947_v50  ;;  %v633_v62 = vadd.f32 %v632_v58, %v631_v56  ;;  %v681_v63 = vadd.f32 %v680_v59, %v679_v57 }
 0x11b   :  { %511 = vst [vmem:[%s1080_s3 + $0x40] sm:$0xff] %v409_v60  ;;  %527 = vst [vmem:[%s1080_s3 + $0xc0] sm:$0xff] %v473_v61  ;;  %v412_v0 = vadd.f32 %v633_v62, %v947_v50  ;;  %v476_v1 = vadd.f32 %v681_v63, %v947_v50 }
 0x11d   :  { %512 = vst [vmem:[%s1080_s3 + $0x48] sm:$0xff] %v412_v0  ;;  %528 = vst [vmem:[%s1080_s3 + $0xc8] sm:$0xff] %v476_v1  ;;  %v634_v2 = vpop.f32.mrb[20].mxu0  ;;  %v682_v3 = vpop.f32.mrb[20].mxu1 }
 0x11e   :  { %v635_v4 = vpop.f32.mrb[21].mxu0  ;;  %v683_v5 = vpop.f32.mrb[21].mxu1 }
 0x11f   :  { %v636_v6 = vadd.f32 %v635_v4, %v634_v2  ;;  %v684_v7 = vadd.f32 %v683_v5, %v682_v3  ;;  %v637_v8 = vpop.f32.mrb[22].mxu0  ;;  %v685_v9 = vpop.f32.mrb[22].mxu1 }
 0x120   :  { %v638_v10 = vpop.f32.mrb[23].mxu0  ;;  %v686_v11 = vpop.f32.mrb[23].mxu1 }
 0x121   :  { %v417_v12 = vadd.f32 %v636_v6, %v947_v50  ;;  %v481_v13 = vadd.f32 %v684_v7, %v947_v50  ;;  %v639_v14 = vadd.f32 %v638_v10, %v637_v8  ;;  %v687_v15 = vadd.f32 %v686_v11, %v685_v9 }
 0x123   :  { %513 = vst [vmem:[%s1080_s3 + $0x50] sm:$0xff] %v417_v12  ;;  %529 = vst [vmem:[%s1080_s3 + $0xd0] sm:$0xff] %v481_v13  ;;  %v420_v16 = vadd.f32 %v639_v14, %v947_v50  ;;  %v484_v17 = vadd.f32 %v687_v15, %v947_v50 }
 0x125   :  { %514 = vst [vmem:[%s1080_s3 + $0x58] sm:$0xff] %v420_v16  ;;  %530 = vst [vmem:[%s1080_s3 + $0xd8] sm:$0xff] %v484_v17  ;;  %v640_v18 = vpop.f32.mrb[24].mxu0  ;;  %v688_v19 = vpop.f32.mrb[24].mxu1 }
 0x126   :  { %v641_v20 = vpop.f32.mrb[25].mxu0  ;;  %v689_v21 = vpop.f32.mrb[25].mxu1 }
 0x127   :  { %v642_v22 = vadd.f32 %v641_v20, %v640_v18  ;;  %v690_v23 = vadd.f32 %v689_v21, %v688_v19  ;;  %v643_v24 = vpop.f32.mrb[26].mxu0  ;;  %v691_v25 = vpop.f32.mrb[26].mxu1 }
 0x128   :  { %v644_v26 = vpop.f32.mrb[27].mxu0  ;;  %v692_v27 = vpop.f32.mrb[27].mxu1 }
 0x129   :  { %v425_v28 = vadd.f32 %v642_v22, %v947_v50  ;;  %v489_v29 = vadd.f32 %v690_v23, %v947_v50  ;;  %v645_v30 = vadd.f32 %v644_v26, %v643_v24  ;;  %v693_v31 = vadd.f32 %v692_v27, %v691_v25 }
 0x12b   :  { %515 = vst [vmem:[%s1080_s3 + $0x60] sm:$0xff] %v425_v28  ;;  %531 = vst [vmem:[%s1080_s3 + $0xe0] sm:$0xff] %v489_v29  ;;  %v428_v32 = vadd.f32 %v645_v30, %v947_v50  ;;  %v492_v33 = vadd.f32 %v693_v31, %v947_v50 }
 0x12d   :  { %516 = vst [vmem:[%s1080_s3 + $0x68] sm:$0xff] %v428_v32  ;;  %532 = vst [vmem:[%s1080_s3 + $0xe8] sm:$0xff] %v492_v33  ;;  %v646_v34 = vpop.f32.mrb[28].mxu0  ;;  %v694_v35 = vpop.f32.mrb[28].mxu1 }
 0x12e   :  { %v647_v36 = vpop.f32.mrb[29].mxu0  ;;  %v695_v37 = vpop.f32.mrb[29].mxu1 }
 0x12f   :  { %v648_v38 = vadd.f32 %v647_v36, %v646_v34  ;;  %v696_v39 = vadd.f32 %v695_v37, %v694_v35  ;;  %v649_v40 = vpop.f32.mrb[30].mxu0  ;;  %v697_v41 = vpop.f32.mrb[30].mxu1 }
 0x130   :  { %v650_v42 = vpop.f32.mrb[31].mxu0  ;;  %v698_v43 = vpop.f32.mrb[31].mxu1 }
 0x131   :  { %v433_v44 = vadd.f32 %v648_v38, %v947_v50  ;;  %v497_v45 = vadd.f32 %v696_v39, %v947_v50  ;;  %v651_v46 = vadd.f32 %v650_v42, %v649_v40  ;;  %v699_v47 = vadd.f32 %v698_v43, %v697_v41 }
 0x133   :  { %517 = vst [vmem:[%s1080_s3 + $0x70] sm:$0xff] %v433_v44  ;;  %533 = vst [vmem:[%s1080_s3 + $0xf0] sm:$0xff] %v497_v45  ;;  %v436_v48 = vadd.f32 %v651_v46, %v947_v50  ;;  %v500_v49 = vadd.f32 %v699_v47, %v947_v50 }
 0x135   :  { %518 = vst [vmem:[%s1080_s3 + $0x78] sm:$0xff] %v436_v48  ;;  %534 = vst [vmem:[%s1080_s3 + $0xf8] sm:$0xff] %v500_v49 }

</bundles_post_ra>
